<compile_context>
chip_gen: v5e
topology: v5e:2x2
jax: 0.10.0
libtpu: 0.0.40
codegen_flags: <defaults>
</compile_context>

<pallas_src>
import functools

import jax
import jax.numpy as jnp
import numpy as np
from jax.experimental import pallas as pl
from jax.experimental.pallas import tpu as pltpu


def _round_up(x, m):
    return (x + m - 1) // m * m


def kan_linear_kernel(glo_ref, ghi_ref, il_ref, ir_ref, fw_ref, x_ref, o_ref,
                      *, spline_order, n_intervals, in_features, n_basis):
    """One N-tile of the fused KANLinear forward.

    glo_ref : (1, L)      lower knot g[j] per column (column = j*F + f), L = nI*F
    ghi_ref : (K+1, L)    row p: knot g[j+p+1] per column
    il_ref  : (K, L)      row p-1: 1/(g[j+p]   - g[j])    (0 where out of range)
    ir_ref  : (K, L)      row p-1: 1/(g[j+p+1] - g[j+1])  (0 where out of range)
    fw_ref  : ((D+1)*F, out_pad)  fused [base_weight.T ; spline weights basis-major]
    x_ref   : (tile_n, F) input rows
    o_ref   : (tile_n, out_pad) output rows
    """
    F = in_features
    x = x_ref[...]                                          # (tn, F) f32

    # x replicated once per knot interval, lane-dense: column j*F + f = x[:, f]
    xrep = jnp.concatenate([x] * n_intervals, axis=1)       # (tn, L)
    glo = glo_ref[...]                                      # (1, L)

    # degree-0 bases: indicator of each knot interval.
    s = ((xrep >= glo) & (xrep < ghi_ref[pl.ds(0, 1), :])).astype(x.dtype)

    # Cox-de Boor recursion, vectorised over all intervals (fully unrolled,
    # spline_order is a small static).  Denominators are pre-inverted on the
    # host; columns past the valid range have inv == 0, so they stay finite
    # and never propagate into the first D basis blocks.
    for p in range(1, spline_order + 1):
        cl = (xrep - glo) * il_ref[pl.ds(p - 1, 1), :]
        cr = (ghi_ref[pl.ds(p, 1), :] - xrep) * ir_ref[pl.ds(p - 1, 1), :]
        # "bases[j+1]" term: shift the slab left by one F-wide lane block.
        s_up = jnp.concatenate(
            [s[:, F:], jnp.zeros((s.shape[0], F), dtype=s.dtype)], axis=1)
        s = cl * s + cr * s_up

    # Fused LHS [silu(x) | B_0 .. B_{D-1}] -> single MXU matmul.
    silu = x * jax.nn.sigmoid(x)
    lhs = jnp.concatenate([silu, s[:, : n_basis * F]], axis=1)
    o_ref[...] = jnp.dot(lhs, fw_ref[...],
                         preferred_element_type=jnp.float32).astype(o_ref.dtype)


def kan_linear(x, base_weight, spline_weight, grid, *,
               grid_size, spline_order, tile_n=256):
    out_features, in_features = base_weight.shape
    K = spline_order
    D = grid_size + spline_order                   # number of spline bases
    G = grid.shape[1]                              # grid_size + 2*K + 1 knots
    nI = G - 1                                     # number of degree-0 intervals
    F = in_features
    L = nI * F
    orig_shape = x.shape

    x2 = x.reshape(-1, in_features).astype(jnp.float32)
    N = x2.shape[0]

    # ---- batch tiling: pad N inside the wrapper; clamp tile_n for tiny N ----
    tn = max(8, min(_round_up(tile_n, 8), _round_up(N, 8)))
    n_pad = _round_up(N, tn)
    if n_pad != N:
        x2 = jnp.pad(x2, ((0, n_pad - N), (0, 0)))

    # ---- lane-dense output: pad out_features to a multiple of 128 ----
    out_pad = _round_up(out_features, 128)

    # ---- knot-grid constants (column j*F + f <-> interval j, feature f) ----
    grid = grid.astype(jnp.float32)

    def _slab(cols):                               # (F, m<=nI) -> (1, L)
        m = cols.shape[1]
        if m < nI:
            cols = jnp.pad(cols, ((0, 0), (0, nI - m)))
        return cols.T.reshape(1, L)

    def _safe_inv(d):
        return jnp.where(d == 0, 0.0, 1.0 / d)

    glo = _slab(grid[:, :nI])                                           # (1, L)
    ghi = jnp.concatenate(
        [_slab(grid[:, p + 1:]) for p in range(K + 1)], axis=0)         # (K+1, L)
    il = jnp.concatenate(
        [_slab(_safe_inv(grid[:, p:] - grid[:, :G - p]))
         for p in range(1, K + 1)], axis=0)                             # (K, L)
    ir = jnp.concatenate(
        [_slab(_safe_inv(grid[:, p + 1:] - grid[:, 1:G - p]))
         for p in range(1, K + 1)], axis=0)                             # (K, L)

    # ---- fused weight: [base_weight.T ; spline_weight basis-major] ----------
    sw_t = jnp.transpose(spline_weight, (2, 1, 0)).reshape(D * F, out_features)
    fused_w = jnp.concatenate([base_weight.T, sw_t], axis=0).astype(jnp.float32)
    if out_pad != out_features:
        fused_w = jnp.pad(fused_w, ((0, 0), (0, out_pad - out_features)))

    kernel = functools.partial(kan_linear_kernel, spline_order=K,
                               n_intervals=nI, in_features=F, n_basis=D)

    out = pl.pallas_call(
        kernel,
        out_shape=jax.ShapeDtypeStruct((n_pad, out_pad), jnp.float32),
        grid_spec=pltpu.PrefetchScalarGridSpec(
            num_scalar_prefetch=0,
            grid=(n_pad // tn,),
            in_specs=[
                pl.BlockSpec((1, L), lambda i: (0, 0)),
                pl.BlockSpec((K + 1, L), lambda i: (0, 0)),
                pl.BlockSpec((K, L), lambda i: (0, 0)),
                pl.BlockSpec((K, L), lambda i: (0, 0)),
                pl.BlockSpec(((D + 1) * F, out_pad), lambda i: (0, 0)),
                pl.BlockSpec((tn, F), lambda i: (i, 0)),
            ],
            out_specs=pl.BlockSpec((tn, out_pad), lambda i: (i, 0)),
        ),
        compiler_params=pltpu.CompilerParams(
            dimension_semantics=("parallel",)),
    )(glo, ghi, il, ir, fused_w, x2)

    out = out[:N, :out_features]
    return out.reshape(*orig_shape[:-1], out_features).astype(x.dtype)


def kan_linear_ref(x, base_weight, spline_weight, grid, *,
                   grid_size, spline_order):
    """Pure-JAX reference matching the PyTorch forward exactly."""
    out_features, in_features = base_weight.shape
    orig_shape = x.shape
    x2 = x.reshape(-1, in_features)
    xe = x2[:, :, None]
    g = grid[None, :, :]
    bases = ((xe >= g[:, :, :-1]) & (xe < g[:, :, 1:])).astype(x2.dtype)
    for p in range(1, spline_order + 1):
        bases = ((xe - g[:, :, :-(p + 1)])
                 / (g[:, :, p:-1] - g[:, :, :-(p + 1)]) * bases[:, :, :-1]
                 + (g[:, :, p + 1:] - xe)
                 / (g[:, :, p + 1:] - g[:, :, 1:-p]) * bases[:, :, 1:])
    base_out = jax.nn.silu(x2) @ base_weight.T
    spline_out = bases.reshape(x2.shape[0], -1) @ \
        spline_weight.reshape(out_features, -1).T
    out = base_out + spline_out
    return out.reshape(*orig_shape[:-1], out_features)


if __name__ == "__main__":
    in_features = 32
    out_features = 32
    grid_size = 5
    spline_order = 3
    grid_range = (-1.0, 1.0)

    # knot grid (in_features, grid_size + 2*spline_order + 1), same as PyTorch
    h = (grid_range[1] - grid_range[0]) / grid_size
    grid_1d = (jnp.arange(-spline_order, grid_size + spline_order + 1,
                          dtype=jnp.float32) * h + grid_range[0])
    grid = jnp.broadcast_to(grid_1d, (in_features, grid_1d.shape[0]))

    key = jax.random.PRNGKey(0)
    kx, kb, ks, kx2 = jax.random.split(key, 4)
    x = jax.random.uniform(kx, (2, 8, in_features), dtype=jnp.float32,
                           minval=-0.95, maxval=0.95)
    base_weight = 0.1 * jax.random.normal(
        kb, (out_features, in_features), dtype=jnp.float32)
    spline_weight = 0.1 * jax.random.normal(
        ks, (out_features, in_features, grid_size + spline_order),
        dtype=jnp.float32)

    # main run (default tile size, single fused tile)
    out = kan_linear(x, base_weight, spline_weight, grid,
                     grid_size=grid_size, spline_order=spline_order)
    out = jax.block_until_ready(out)
    ref = kan_linear_ref(x, base_weight, spline_weight, grid,
                         grid_size=grid_size, spline_order=spline_order)
    np.testing.assert_allclose(np.asarray(out), np.asarray(ref),
                               rtol=1e-5, atol=1e-5)

    # extra check: ragged N + multiple grid steps (exercises padding path)
    x_rag = jax.random.uniform(kx2, (3, 7, in_features), dtype=jnp.float32,
                               minval=-0.95, maxval=0.95)
    out_rag = kan_linear(x_rag, base_weight, spline_weight, grid,
                         grid_size=grid_size, spline_order=spline_order,
                         tile_n=8)
    out_rag = jax.block_until_ready(out_rag)
    ref_rag = kan_linear_ref(x_rag, base_weight, spline_weight, grid,
                             grid_size=grid_size, spline_order=spline_order)
    np.testing.assert_allclose(np.asarray(out_rag), np.asarray(ref_rag),
                               rtol=1e-5, atol=1e-5)

    print("KERNEL_OK")
</pallas_src>

<mosaic_0001>
module attributes {stable_mosaic.version = 11 : i64} {
  func.func @kan_linear_kernel(%arg0: i32, %arg1: memref<1x352xf32, #tpu.memory_space<vmem>>, %arg2: memref<4x352xf32, #tpu.memory_space<vmem>>, %arg3: memref<3x352xf32, #tpu.memory_space<vmem>>, %arg4: memref<3x352xf32, #tpu.memory_space<vmem>>, %arg5: memref<288x128xf32, #tpu.memory_space<vmem>>, %arg6: memref<16x32xf32, #tpu.memory_space<vmem>>, %arg7: memref<16x128xf32, #tpu.memory_space<vmem>>) attributes {dimension_semantics = [#tpu.dimension_semantics<parallel>], iteration_bounds = array<i64: 1>, scalar_prefetch = 0 : i64, scratch_operands = 0 : i64, tpu.core_type = #tpu.core_type<tc>, window_params = [{pipeline_mode = #tpu.pipeline_mode<synchronous>, transform_indices = @transform_0, window_bounds = array<i64: 1, 352>}, {pipeline_mode = #tpu.pipeline_mode<synchronous>, transform_indices = @transform_1, window_bounds = array<i64: 4, 352>}, {pipeline_mode = #tpu.pipeline_mode<synchronous>, transform_indices = @transform_2, window_bounds = array<i64: 3, 352>}, {pipeline_mode = #tpu.pipeline_mode<synchronous>, transform_indices = @transform_3, window_bounds = array<i64: 3, 352>}, {pipeline_mode = #tpu.pipeline_mode<synchronous>, transform_indices = @transform_4, window_bounds = array<i64: 288, 128>}, {transform_indices = @transform_5, window_bounds = array<i64: 16, 32>}, {transform_indices = @transform_6, window_bounds = array<i64: 16, 128>}]} {
    %c0 = arith.constant 0 : index
    %c0_0 = arith.constant 0 : index
    %0 = vector.load %arg6[%c0, %c0_0] : memref<16x32xf32, #tpu.memory_space<vmem>>, vector<16x32xf32>
    %1 = tpu.concatenate %0, %0, %0, %0, %0, %0, %0, %0, %0, %0, %0 in 1 : vector<16x32xf32>, vector<16x32xf32>, vector<16x32xf32>, vector<16x32xf32>, vector<16x32xf32>, vector<16x32xf32>, vector<16x32xf32>, vector<16x32xf32>, vector<16x32xf32>, vector<16x32xf32>, vector<16x32xf32> -> vector<16x352xf32>
    %c0_1 = arith.constant 0 : index
    %c0_2 = arith.constant 0 : index
    %2 = vector.load %arg1[%c0_1, %c0_2] : memref<1x352xf32, #tpu.memory_space<vmem>>, vector<1x352xf32>
    %3 = vector.broadcast %2 : vector<1x352xf32> to vector<16x352xf32>
    %4 = arith.cmpf oge, %1, %3 : vector<16x352xf32>
    %c0_3 = arith.constant 0 : index
    %c0_4 = arith.constant 0 : index
    %5 = vector.load %arg2[%c0_3, %c0_4] : memref<4x352xf32, #tpu.memory_space<vmem>>, vector<1x352xf32>
    %6 = vector.broadcast %5 : vector<1x352xf32> to vector<16x352xf32>
    %7 = arith.cmpf olt, %1, %6 : vector<16x352xf32>
    %8 = arith.andi %4, %7 : vector<16x352xi1>
    %9 = arith.extui %8 : vector<16x352xi1> to vector<16x352xi32>
    %10 = arith.sitofp %9 : vector<16x352xi32> to vector<16x352xf32>
    %11 = vector.broadcast %2 : vector<1x352xf32> to vector<16x352xf32>
    %12 = arith.subf %1, %11 : vector<16x352xf32>
    %c0_5 = arith.constant 0 : index
    %c0_6 = arith.constant 0 : index
    %13 = vector.load %arg3[%c0_5, %c0_6] : memref<3x352xf32, #tpu.memory_space<vmem>>, vector<1x352xf32>
    %14 = vector.broadcast %13 : vector<1x352xf32> to vector<16x352xf32>
    %15 = arith.mulf %12, %14 : vector<16x352xf32>
    %c1 = arith.constant 1 : index
    %c0_7 = arith.constant 0 : index
    %16 = vector.load %arg2[%c1, %c0_7] : memref<4x352xf32, #tpu.memory_space<vmem>>, vector<1x352xf32>
    %17 = vector.broadcast %16 : vector<1x352xf32> to vector<16x352xf32>
    %18 = arith.subf %17, %1 : vector<16x352xf32>
    %c0_8 = arith.constant 0 : index
    %c0_9 = arith.constant 0 : index
    %19 = vector.load %arg4[%c0_8, %c0_9] : memref<3x352xf32, #tpu.memory_space<vmem>>, vector<1x352xf32>
    %20 = vector.broadcast %19 : vector<1x352xf32> to vector<16x352xf32>
    %21 = arith.mulf %18, %20 : vector<16x352xf32>
    %22 = vector.extract_strided_slice %10 {offsets = [0, 32], sizes = [16, 320], strides = [1, 1]} : vector<16x352xf32> to vector<16x320xf32>
    %cst = arith.constant 0.000000e+00 : f32
    %23 = vector.broadcast %cst : f32 to vector<16x32xf32>
    %24 = tpu.concatenate %22, %23 in 1 : vector<16x320xf32>, vector<16x32xf32> -> vector<16x352xf32>
    %25 = arith.mulf %15, %10 : vector<16x352xf32>
    %26 = arith.mulf %21, %24 : vector<16x352xf32>
    %27 = arith.addf %25, %26 : vector<16x352xf32>
    %28 = vector.broadcast %2 : vector<1x352xf32> to vector<16x352xf32>
    %29 = arith.subf %1, %28 : vector<16x352xf32>
    %c1_10 = arith.constant 1 : index
    %c0_11 = arith.constant 0 : index
    %30 = vector.load %arg3[%c1_10, %c0_11] : memref<3x352xf32, #tpu.memory_space<vmem>>, vector<1x352xf32>
    %31 = vector.broadcast %30 : vector<1x352xf32> to vector<16x352xf32>
    %32 = arith.mulf %29, %31 : vector<16x352xf32>
    %c2 = arith.constant 2 : index
    %c0_12 = arith.constant 0 : index
    %33 = vector.load %arg2[%c2, %c0_12] : memref<4x352xf32, #tpu.memory_space<vmem>>, vector<1x352xf32>
    %34 = vector.broadcast %33 : vector<1x352xf32> to vector<16x352xf32>
    %35 = arith.subf %34, %1 : vector<16x352xf32>
    %c1_13 = arith.constant 1 : index
    %c0_14 = arith.constant 0 : index
    %36 = vector.load %arg4[%c1_13, %c0_14] : memref<3x352xf32, #tpu.memory_space<vmem>>, vector<1x352xf32>
    %37 = vector.broadcast %36 : vector<1x352xf32> to vector<16x352xf32>
    %38 = arith.mulf %35, %37 : vector<16x352xf32>
    %39 = vector.extract_strided_slice %27 {offsets = [0, 32], sizes = [16, 320], strides = [1, 1]} : vector<16x352xf32> to vector<16x320xf32>
    %cst_15 = arith.constant 0.000000e+00 : f32
    %40 = vector.broadcast %cst_15 : f32 to vector<16x32xf32>
    %41 = tpu.concatenate %39, %40 in 1 : vector<16x320xf32>, vector<16x32xf32> -> vector<16x352xf32>
    %42 = arith.mulf %32, %27 : vector<16x352xf32>
    %43 = arith.mulf %38, %41 : vector<16x352xf32>
    %44 = arith.addf %42, %43 : vector<16x352xf32>
    %45 = vector.broadcast %2 : vector<1x352xf32> to vector<16x352xf32>
    %46 = arith.subf %1, %45 : vector<16x352xf32>
    %c2_16 = arith.constant 2 : index
    %c0_17 = arith.constant 0 : index
    %47 = vector.load %arg3[%c2_16, %c0_17] : memref<3x352xf32, #tpu.memory_space<vmem>>, vector<1x352xf32>
    %48 = vector.broadcast %47 : vector<1x352xf32> to vector<16x352xf32>
    %49 = arith.mulf %46, %48 : vector<16x352xf32>
    %c3 = arith.constant 3 : index
    %c0_18 = arith.constant 0 : index
    %50 = vector.load %arg2[%c3, %c0_18] : memref<4x352xf32, #tpu.memory_space<vmem>>, vector<1x352xf32>
    %51 = vector.broadcast %50 : vector<1x352xf32> to vector<16x352xf32>
    %52 = arith.subf %51, %1 : vector<16x352xf32>
    %c2_19 = arith.constant 2 : index
    %c0_20 = arith.constant 0 : index
    %53 = vector.load %arg4[%c2_19, %c0_20] : memref<3x352xf32, #tpu.memory_space<vmem>>, vector<1x352xf32>
    %54 = vector.broadcast %53 : vector<1x352xf32> to vector<16x352xf32>
    %55 = arith.mulf %52, %54 : vector<16x352xf32>
    %56 = vector.extract_strided_slice %44 {offsets = [0, 32], sizes = [16, 320], strides = [1, 1]} : vector<16x352xf32> to vector<16x320xf32>
    %cst_21 = arith.constant 0.000000e+00 : f32
    %57 = vector.broadcast %cst_21 : f32 to vector<16x32xf32>
    %58 = tpu.concatenate %56, %57 in 1 : vector<16x320xf32>, vector<16x32xf32> -> vector<16x352xf32>
    %59 = arith.mulf %49, %44 : vector<16x352xf32>
    %60 = arith.mulf %55, %58 : vector<16x352xf32>
    %61 = arith.addf %59, %60 : vector<16x352xf32>
    %62 = arith.negf %0 : vector<16x32xf32>
    %63 = math.exp %62 : vector<16x32xf32>
    %cst_22 = arith.constant 1.000000e+00 : f32
    %64 = vector.broadcast %cst_22 : f32 to vector<16x32xf32>
    %65 = arith.addf %64, %63 : vector<16x32xf32>
    %66 = arith.divf %64, %65 : vector<16x32xf32>
    %67 = arith.mulf %0, %66 : vector<16x32xf32>
    %68 = vector.extract_strided_slice %61 {offsets = [0, 0], sizes = [16, 256], strides = [1, 1]} : vector<16x352xf32> to vector<16x256xf32>
    %69 = tpu.concatenate %67, %68 in 1 : vector<16x32xf32>, vector<16x256xf32> -> vector<16x288xf32>
    %c0_23 = arith.constant 0 : index
    %c0_24 = arith.constant 0 : index
    %70 = vector.load %arg5[%c0_23, %c0_24] : memref<288x128xf32, #tpu.memory_space<vmem>>, vector<288x128xf32>
    %cst_25 = arith.constant dense<0.000000e+00> : vector<16x128xf32>
    %71 = tpu.matmul %69, %70, %cst_25 {dimension_numbers = #tpu.dot_dimension_numbers<[1], [0], [0], [1], [0, 0, 1, 1], [], []>} : vector<16x288xf32>, vector<288x128xf32>, vector<16x128xf32> -> vector<16x128xf32>
    %c0_26 = arith.constant 0 : index
    %c0_27 = arith.constant 0 : index
    %72 = vector.load %arg7[%c0_26, %c0_27] : memref<16x128xf32, #tpu.memory_space<vmem>>, vector<16x128xf32>
    tpu.vector_store %arg7[%c0_26, %c0_27], %71 {strides = array<i32>} : memref<16x128xf32, #tpu.memory_space<vmem>>, vector<16x128xf32>,
    return
  }
  func.func @transform_0(%arg0: i32) -> (i32, i32) {
    %c0_i32 = arith.constant 0 : i32
    %c0_i32_0 = arith.constant 0 : i32
    %c0_i32_1 = arith.constant 0 : i32
    return %c0_i32, %c0_i32_0 : i32, i32
  }
  func.func @transform_1(%arg0: i32) -> (i32, i32) {
    %c0_i32 = arith.constant 0 : i32
    %c0_i32_0 = arith.constant 0 : i32
    %c0_i32_1 = arith.constant 0 : i32
    return %c0_i32, %c0_i32_0 : i32, i32
  }
  func.func @transform_2(%arg0: i32) -> (i32, i32) {
    %c0_i32 = arith.constant 0 : i32
    %c0_i32_0 = arith.constant 0 : i32
    %c0_i32_1 = arith.constant 0 : i32
    return %c0_i32, %c0_i32_0 : i32, i32
  }
  func.func @transform_3(%arg0: i32) -> (i32, i32) {
    %c0_i32 = arith.constant 0 : i32
    %c0_i32_0 = arith.constant 0 : i32
    %c0_i32_1 = arith.constant 0 : i32
    return %c0_i32, %c0_i32_0 : i32, i32
  }
  func.func @transform_4(%arg0: i32) -> (i32, i32) {
    %c0_i32 = arith.constant 0 : i32
    %c0_i32_0 = arith.constant 0 : i32
    %c0_i32_1 = arith.constant 0 : i32
    return %c0_i32, %c0_i32_0 : i32, i32
  }
  func.func @transform_5(%arg0: i32) -> (i32, i32) {
    %c0_i32 = arith.constant 0 : i32
    %c0_i32_0 = arith.constant 0 : i32
    return %arg0, %c0_i32 : i32, i32
  }
  func.func @transform_6(%arg0: i32) -> (i32, i32) {
    %c0_i32 = arith.constant 0 : i32
    %c0_i32_0 = arith.constant 0 : i32
    return %arg0, %c0_i32 : i32, i32
  }
}

</mosaic_0001>

<bundles_post_ra>
// kernel: tpu_custom_call.1
= control target key start
LH: loop header
LB: loop body
LE: loop exit
PB: predicated region body
PF: predicated region fallthrough
CT: control target
= control target key end

     0   :  { %11 = vsyncpa [#allocation3], 0  ;;  %s1118_s0 = inlined_call_operand.hbm [shape: f32[1,352], index: 0, kind: input, shape index: {}]   ;;  %s1119_s1 = inlined_call_operand.hbm [shape: f32[4,352], index: 1, kind: input, shape index: {}]   ;;  %s1120_s2 = inlined_call_operand.hbm [shape: f32[3,352], index: 2, kind: input, shape index: {}]   ;;  %s1121_s3 = inlined_call_operand.hbm [shape: f32[3,352], index: 3, kind: input, shape index: {}]   ;;  %s1122_s4 = inlined_call_operand.hbm [shape: f32[288,128], index: 4, kind: input, shape index: {}]   ;;  %s1123_s5 = inlined_call_operand.hbm [shape: f32[16,32], index: 5, kind: input, shape index: {}]   ;;  %s1124_s6 = inlined_call_operand.hbm [shape: f32[16,128], index: 6, kind: output, shape index: {}]  }
   0x1   :  { %12 = vsyncpa [#allocation6], 0 }
   0x2   :  { %13 = vsyncpa [#allocation9], 0 }
   0x3   :  { %14 = vsyncpa [#allocation12], 0  ;;  %s32_s23 = sshll.u32 %s1119_s1, 4  ;;  %s33_s23 = int_to_ptr.hbm [resolvable:$true] %s32_s23 }
   0x4   :  { %15 = vsyncpa [#allocation4], 0  ;;  %s886_s24 = smov [#allocation5]   ;;  %s54_s28 = sshll.u32 %s1121_s3, 4  ;;  %s55_s28 = int_to_ptr.hbm [resolvable:$true] %s54_s28 }
   0x5   :  { %s34_s25 = sshll.u32 %s886_s24, 4  ;;  %s887_s29 = smov [#allocation8]   ;;  %s35_s25 = int_to_ptr.vmem [resolvable:$true] %s34_s25 }
   0x6   :  { %37 = dma.hbm_to_vmem [thread:$0]  %s33_s23, 192, %s35_s25, [#allocation6]  }
   0x7   :  { %s56_s30 = sshll.u32 %s887_s29, 4  ;;  %s21_s9 = sshll.u32 %s1118_s0, 4  ;;  %s57_s30 = int_to_ptr.vmem [resolvable:$true] %s56_s30  ;;  %s22_s9 = int_to_ptr.hbm [resolvable:$true] %s21_s9 }
   0x8   :  { %59 = dma.hbm_to_vmem [thread:$0]  %s55_s28, 192, %s57_s30, [#allocation9]  }
   0x9   :  { %s43_s11 = sshll.u32 %s1120_s2, 4  ;;  %s888_s12 = smov [#allocation2]   ;;  %s44_s11 = int_to_ptr.hbm [resolvable:$true] %s43_s11 }
   0xa   :  { %s23_s13 = sshll.u32 %s888_s12, 4  ;;  %s889_s3 = smov [#allocation7]   ;;  %s24_s13 = int_to_ptr.vmem [resolvable:$true] %s23_s13 }
   0xb   :  { %26 = dma.hbm_to_vmem [thread:$0]  %s22_s9, 48, %s24_s13, [#allocation3]  }
   0xc   :  { %s45_s14 = sshll.u32 %s889_s3, 4  ;;  %s64_s17 = sshll.u32 %s1122_s4, 4  ;;  %s46_s14 = int_to_ptr.vmem [resolvable:$true] %s45_s14  ;;  %s65_s17 = int_to_ptr.hbm [resolvable:$true] %s64_s17 }
   0xd   :  { %48 = dma.hbm_to_vmem [thread:$0]  %s44_s11, 192, %s46_s14, [#allocation6]  }
   0xe   :  { %s890_s0 = smov [#allocation10]   ;;  %s77_s2 = sshll.u32 %s1123_s5, 4  ;;  %s78_s2 = int_to_ptr.hbm [resolvable:$true] %s77_s2 }
   0xf   :  { %s66_s18 = sshll.u32 %s890_s0, 4  ;;  %s891_s21 = smov 128   ;;  %s67_s18 = int_to_ptr.vmem [resolvable:$true] %s66_s18 }
  0x10   :  { %s892_s22 = smov 8   ;;  %s893_s23 = smov [#allocation11]  }
  0x11   :  { %72 = dma.hbm_to_vmem [thread:$0]  %s65_s17, 4608, %s67_s18, [#allocation9], %s891_s21, %s891_s21, %s892_s22  }
  0x12   :  { %s79_s24 = sshll.u32 %s893_s23, 4  ;;  %s80_s24 = int_to_ptr.vmem [resolvable:$true] %s79_s24 }
  0x13   :  { %85 = dma.hbm_to_vmem [thread:$0]  %s78_s2, 256, %s80_s24, [#allocation12], %s891_s21, %s891_s21, %s892_s22  }
  0x14   :  { %876 = dma.done.wait [#allocation3], 48  }
  0x15   :  { %877 = vsyncadd [#allocation3], 4294967248 }
  0x16   :  { %878 = dma.done.wait [#allocation6], 384  }
  0x17   :  { %879 = vsyncadd [#allocation6], 4294966912 }
  0x18   :  { %880 = dma.done.wait [#allocation9], 4800  }
  0x19   :  { %881 = vsyncadd [#allocation9], 4294962496 }
  0x1a   :  { %882 = dma.done.wait [#allocation12], 256  }
  0x1b   :  { %883 = vsyncadd [#allocation12], 4294967040  ;;  %v958_v0 = vld [vmem:[#allocation11] sm:$0xff]  ;;  %s894_s4 = smov 96   ;;  %s895_s5 = smov 32   ;;  %v964_v1 = vld [vmem:[#allocation11 + $0x8] sm:$0xff] }
  0x1c   :  { %126 = vrot.lane.b32.xlu1 %v958_v0, %s894_s4  ;;  %114 = vrot.lane.b32.xlu0 %v958_v0, %s895_s5  ;;  %s896_s25 = smov 64   ;;  %v141_v5 = vld [vmem:[#allocation2] sm:$0x7]  ;;  %v155_v6 = vld [vmem:[#allocation5] ss:$4 sm:$0x7] }
  0x1d   :  { %122 = vrot.lane.b32.xlu2 %v964_v1, %s896_s25  ;;  %vm132_vm0 = vcmask 261120   ;;  %vm135_vm1 = vcmask 523264   ;;  %v972_v7 = vperm.slane %v141_v5, 2  ;;  %v159_v8 = vperm.slane %v155_v6, 2  ;;  %s898_s26 = smov [#allocation13]   ;;  %s625_s30 = sshll.u32 %s1124_s6, 4  ;;  %s626_s30 = int_to_ptr.hbm [resolvable:$true] %s625_s30 }
  0x1e   :  { %v974_v9 = vld [vmem:[#allocation7] ss:$4 sm:$0x7]  ;;  %vm138_vm2 = vcmask 785408   ;;  %v144_v11 = vperm.slane %v141_v5, 1  ;;  %v158_v12 = vperm.slane %v155_v6, 1 }
  0x1f   :  { %v143_v16 = vperm.slane %v141_v5, 0  ;;  %v157_v19 = vperm.slane %v155_v6, 0  ;;  %v196_v20 = vperm.slane %v974_v9, 1  ;;  %v897_v24 = vmov 0.0   ;;  %s623_s27 = sshll.u32 %s898_s26, 4  ;;  %s624_s27 = int_to_ptr.vmem [resolvable:$true] %s623_s27 }
  0x20   :  { %v197_v29 = vperm.slane %v974_v9, 2  ;;  %v195_v35 = vperm.slane %v974_v9, 0  ;;  %v208_v54 = vld [vmem:[#allocation5 + $0x1] ss:$4 sm:$0x7] }
  0x21   :  { %v212_v55 = vperm.slane %v208_v54, 2  ;;  %v211_v56 = vperm.slane %v208_v54, 1  ;;  %v222_v57 = vld [vmem:[#allocation8] ss:$4 sm:$0x7] }
  0x22   :  { %v226_v59 = vperm.slane %v222_v57, 2  ;;  %v225_v60 = vperm.slane %v222_v57, 1  ;;  %v285_v62 = vld [vmem:[#allocation7 + $0x1] ss:$4 sm:$0x7] }
  0x23   :  { %v289_v6 = vperm.slane %v285_v62, 2 }
  0x24   :  { %116 = vrot.lane.b32.xlu1 %v964_v1, %s895_s5  ;;  %120 = vrot.lane.b32.xlu0 %v958_v0, %s896_s25 }
  0x25   :  { %128 = vrot.lane.b32.xlu2 %v964_v1, %s894_s4 }
  0x77   :  { %v123_v2 = vpop.permute.xlu2 %122 }
  0x7f   :  { %v129_v10 = vpop.permute.xlu2 %128 }
  0x8e   :  { %v127_v3 = vpop.permute.xlu1 %126  ;;  %v115_v4 = vpop.permute.xlu0 %114 }
  0x8f   :  { %v133_v13 = vsel %vm132_vm0, %v958_v0, %v115_v4 }
  0x96   :  { %v117_v14 = vpop.permute.xlu1 %116  ;;  %v121_v15 = vpop.permute.xlu0 %120 }
  0x97   :  { %v134_v17 = vsel %vm132_vm0, %v964_v1, %v117_v14  ;;  %v981_v18 = vsel %vm135_vm1, %v133_v13, %v121_v15 }
  0x98   :  { %v985_v21 = vsel %vm135_vm1, %v134_v17, %v123_v2  ;;  %v989_v22 = vsel %vm138_vm2, %v981_v18, %v127_v3  ;;  %vm151_vm3 = vcmp.ge.f32.partialorder %v981_v18, %v972_v7  ;;  %vm165_vm4 = vcmp.lt.f32.partialorder %v981_v18, %v159_v8 }
  0x99   :  { %v996_v23 = vsel %vm138_vm2, %v985_v21, %v129_v10  ;;  %vm150_vm5 = vcmp.ge.f32.partialorder %v989_v22, %v144_v11  ;;  %vm164_vm6 = vcmp.lt.f32.partialorder %v989_v22, %v158_v12  ;;  %vm171_vm7 = vmand %vm151_vm3, %vm165_vm4  ;;  %vm154_vm8 = vcmp.ge.f32.partialorder %v985_v21, %v972_v7 }
  0x9a   :  { %vm170_vm9 = vmand %vm150_vm5, %vm164_vm6  ;;  %v643_v25 = vsel %vm171_vm7, 1.0, %v897_v24  ;;  %vm153_vm10 = vcmp.ge.f32.partialorder %v996_v23, %v144_v11  ;;  %vm167_vm11 = vcmp.lt.f32.partialorder %v996_v23, %v158_v12  ;;  %vm168_vm12 = vcmp.lt.f32.partialorder %v985_v21, %v159_v8 }
  0x9b   :  { %v642_v26 = vsel %vm170_vm9, 1.0, %v897_v24  ;;  %vm173_vm13 = vmand %vm153_vm10, %vm167_vm11  ;;  %vm149_vm14 = vcmp.ge.f32.partialorder %v989_v22, %v143_v16  ;;  %vm152_vm15 = vcmp.ge.f32.partialorder %v996_v23, %v143_v16  ;;  %vm163_vm3 = vcmp.lt.f32.partialorder %v989_v22, %v157_v19 }
  0x9c   :  { %v680_v27 = vpack.i.bf16 %v643_v25, %v642_v26  ;;  %vm174_vm4 = vmand %vm154_vm8, %vm168_vm12  ;;  %v645_v28 = vsel %vm173_vm13, 1.0, %v897_v24  ;;  %vm166_vm5 = vcmp.lt.f32.partialorder %v996_v23, %v157_v19  ;;  %v1011_v31 = vsub.f32 %v989_v22, %v144_v11 }
  0x9d   :  { %v646_v30 = vsel %vm174_vm4, 1.0, %v897_v24  ;;  %vm169_vm6 = vmand %vm149_vm14, %vm163_vm3  ;;  %v1016_v34 = vsub.f32 %v981_v18, %v972_v7  ;;  %v1023_v40 = vsub.f32 %v989_v22, %v143_v16  ;;  %v1026_v42 = vsub.f32 %v996_v23, %v144_v11 }
  0x9e   :  { %681 = vrot.lane.b32.xlu0 %v680_v27, %s894_s4  ;;  %v690_v32 = vpack.i.bf16 %v646_v30, %v645_v28  ;;  %vm172_vm7 = vmand %vm152_vm15, %vm166_vm5  ;;  %v641_v33 = vsel %vm169_vm6, 1.0, %v897_v24  ;;  %v202_v37 = vmul.f32 %v196_v20, %v1011_v31  ;;  %v1029_v43 = vsub.f32 %v996_v23, %v143_v16 }
  0x9f   :  { %v644_v36 = vsel %vm172_vm7, 1.0, %v897_v24  ;;  %v203_v39 = vmul.f32 %v197_v29, %v1016_v34  ;;  %v201_v45 = vmul.f32 %v195_v35, %v1023_v40  ;;  %v205_v46 = vmul.f32 %v196_v20, %v1026_v42 }
  0xa0   :  { %691 = vrot.lane.b32.xlu2 %v690_v32, %s894_s4  ;;  %v685_v38 = vpack.i.bf16 %v644_v36, %v641_v33  ;;  %v267_v41 = vmul.f32 %v642_v26, %v202_v37  ;;  %v204_v47 = vmul.f32 %v195_v35, %v1029_v43  ;;  %v192_v48 = vsub.f32 %v985_v21, %v972_v7 }
  0xa1   :  { %v268_v44 = vmul.f32 %v643_v25, %v203_v39  ;;  %v1037_v49 = vmul.f32 %v641_v33, %v201_v45  ;;  %v270_v50 = vmul.f32 %v645_v28, %v205_v46  ;;  %v221_v58 = vsub.f32 %v212_v55, %v985_v21 }
  0xa2   :  { %686 = vrot.lane.b32.xlu1 %v685_v38, %s894_s4  ;;  %v1039_v51 = vmul.f32 %v644_v36, %v204_v47  ;;  %v206_v52 = vmul.f32 %v197_v29, %v192_v48  ;;  %v220_v61 = vsub.f32 %v211_v56, %v996_v23  ;;  %v288_v7 = vperm.slane %v285_v62, 1 }
  0xa3   :  { %v235_v4 = vmul.f32 %v226_v59, %v221_v58  ;;  %v298_v15 = vmul.f32 %v289_v6, %v192_v48  ;;  %v210_v19 = vperm.slane %v208_v54, 0  ;;  %v218_v20 = vsub.f32 %v212_v55, %v981_v18 }
  0xa4   :  { %v271_v53 = vmul.f32 %v646_v30, %v206_v52  ;;  %v234_v5 = vmul.f32 %v225_v60, %v220_v61  ;;  %v297_v14 = vmul.f32 %v288_v7, %v1026_v42  ;;  %v217_v24 = vsub.f32 %v211_v56, %v989_v22 }
  0xa5   :  { %v216_v28 = vsub.f32 %v210_v19, %v989_v22  ;;  %v224_v29 = vperm.slane %v222_v57, 0  ;;  %v232_v30 = vmul.f32 %v226_v59, %v218_v20  ;;  %v219_v33 = vsub.f32 %v210_v19, %v996_v23 }
  0xa6   :  { %v231_v32 = vmul.f32 %v225_v60, %v217_v24  ;;  %v287_v48 = vperm.slane %v285_v62, 0  ;;  %v295_v54 = vmul.f32 %v289_v6, %v1016_v34  ;;  %v294_v57 = vmul.f32 %v288_v7, %v1011_v31 }
  0xa7   :  { %v230_v47 = vmul.f32 %v224_v29, %v216_v28 }
  0xa8   :  { %v293_v34 = vmul.f32 %v287_v48, %v1023_v40  ;;  %v296_v62 = vmul.f32 %v287_v48, %v1029_v43 }
  0xfa   :  { %v692_v63 = vpop.permute.xlu2 %691 }
  0xfb   :  { %v694_v2 = vunpack.i.h.bf16 %v692_v63  ;;  %v693_v3 = vunpack.i.l.bf16 %v692_v63 }
  0xfd   :  { %v265_v8 = vsel %vm135_vm1, %v694_v2, 0.0  ;;  %v257_v9 = vsel %vm138_vm2, %v693_v3, %v694_v2 }
  0xfe   :  { %v277_v10 = vmul.f32 %v265_v8, %v235_v4  ;;  %v276_v11 = vmul.f32 %v257_v9, %v234_v5 }
 0x100   :  { %v282_v12 = vadd.f32 %v276_v11, %v270_v50  ;;  %v283_v13 = vadd.f32 %v277_v10, %v271_v53  ;;  %v233_v53 = vmul.f32 %v224_v29, %v219_v33 }
 0x102   :  { %v1046_v16 = vmul.f32 %v297_v14, %v282_v12  ;;  %v364_v17 = vmul.f32 %v298_v15, %v283_v13 }
 0x110   :  { %v682_v25 = vpop.permute.xlu0 %681 }
 0x111   :  { %v684_v26 = vunpack.i.h.bf16 %v682_v25  ;;  %v683_v27 = vunpack.i.l.bf16 %v682_v25  ;;  %v378_v25 = vld [vmem:[#allocation7 + $0x2] ss:$4 sm:$0x7] }
 0x113   :  { %v264_v35 = vsel %vm135_vm1, %v684_v26, 0.0  ;;  %v255_v36 = vsel %vm138_vm2, %v683_v27, %v684_v26  ;;  %v380_v26 = vperm.slane %v378_v25, 0 }
 0x114   :  { %v274_v37 = vmul.f32 %v264_v35, %v232_v30  ;;  %v687_v38 = vpop.permute.xlu1 %686  ;;  %v273_v39 = vmul.f32 %v255_v36, %v231_v32  ;;  %v381_v32 = vperm.slane %v378_v25, 1 }
 0x115   :  { %v689_v45 = vunpack.i.h.bf16 %v687_v38  ;;  %v688_v46 = vunpack.i.l.bf16 %v687_v38 }
 0x116   :  { %v279_v50 = vadd.f32 %v273_v39, %v267_v41  ;;  %v280_v52 = vadd.f32 %v274_v37, %v268_v44 }
 0x117   :  { %v256_v55 = vsel %vm138_vm2, %v689_v45, %v693_v3  ;;  %v254_v56 = vsel %vm138_vm2, %v688_v46, %v683_v27  ;;  %v300_v3 = vld [vmem:[#allocation5 + $0x2] ss:$4 sm:$0x7] }
 0x118   :  { %337 = vrot.lane.b32.xlu0 %v279_v50, %s894_s4  ;;  %339 = vrot.lane.b32.xlu1 %v280_v52, %s894_s4  ;;  %v272_v58 = vmul.f32 %v254_v56, %v230_v47  ;;  %v275_v59 = vmul.f32 %v256_v55, %v233_v53  ;;  %v361_v60 = vmul.f32 %v295_v54, %v280_v52  ;;  %v304_v5 = vperm.slane %v300_v3, 2 }
 0x119   :  { %v360_v61 = vmul.f32 %v294_v57, %v279_v50  ;;  %v302_v11 = vperm.slane %v300_v3, 0  ;;  %v303_v14 = vperm.slane %v300_v3, 1  ;;  %v385_v50 = vmul.f32 %v381_v32, %v1011_v31  ;;  %v539_v3 = vld [vmem:[#allocation10 + $0xf8] sm:$0xff] }
 0x11a   :  { %v278_v41 = vadd.f32 %v272_v58, %v1037_v49  ;;  %v281_v44 = vadd.f32 %v275_v59, %v1039_v51  ;;  %v315_v49 = vld [vmem:[#allocation8 + $0x1] ss:$4 sm:$0x7]  ;;  %v313_v51 = vsub.f32 %v304_v5, %v985_v21  ;;  %v310_v20 = vsub.f32 %v304_v5, %v981_v18  ;;  %571 = vmatpush.msra.mxu1 %v539_v3  ;;  %v400_v5 = vld [vmem:[#allocation8 + $0x2] ss:$4 sm:$0x7] }
 0x11b   :  { %v319_v6 = vperm.slane %v315_v49, 2  ;;  %v308_v19 = vsub.f32 %v302_v11, %v989_v22  ;;  %v318_v24 = vperm.slane %v315_v49, 1  ;;  %v384_v18 = vmul.f32 %v380_v26, %v1023_v40 }
 0x11c   :  { %335 = vrot.lane.b32.xlu2 %v278_v41, %s894_s4  ;;  %v359_v63 = vmul.f32 %v293_v34, %v278_v41  ;;  %v362_v2 = vmul.f32 %v296_v62, %v281_v44  ;;  %v312_v39 = vsub.f32 %v303_v14, %v996_v23  ;;  %v311_v45 = vsub.f32 %v302_v11, %v996_v23 }
 0x11d   :  { %v328_v7 = vmul.f32 %v319_v6, %v313_v51  ;;  %v325_v29 = vmul.f32 %v319_v6, %v310_v20  ;;  %v386_v31 = vmul.f32 %v380_v26, %v1029_v43  ;;  %v403_v51 = vperm.slane %v400_v5, 1 }
 0x11e   :  { %v327_v54 = vmul.f32 %v318_v24, %v312_v39  ;;  %v536_v39 = vld [vmem:[#allocation10 + $0xe0] sm:$0xff] }
 0x120   :  { %343 = vrot.lane.b32.xlu1 %v282_v12, %s894_s4  ;;  %341 = vrot.lane.b32.xlu0 %v281_v44, %s894_s4  ;;  %v317_v12 = vperm.slane %v315_v49, 0  ;;  %v387_v44 = vmul.f32 %v381_v32, %v1026_v42  ;;  %v402_v49 = vperm.slane %v400_v5, 0  ;;  %v527_v5 = vld [vmem:[#allocation10 + $0x98] sm:$0xff] }
 0x122   :  { %v323_v21 = vmul.f32 %v317_v12, %v308_v19  ;;  %v326_v40 = vmul.f32 %v317_v12, %v311_v45  ;;  %v543_v45 = vld [vmem:[#allocation10 + $0x118] sm:$0xff] }
 0x123   :  { %606 = vmatpush.msra.mxu2 %v543_v45 }
 0x124   :  { %345 = vrot.lane.b32.xlu2 %v283_v13, %s894_s4  ;;  %v309_v13 = vsub.f32 %v303_v14, %v989_v22 }
 0x126   :  { %v324_v28 = vmul.f32 %v318_v24, %v309_v13 }
 0x176   :  { %v336_v4 = vpop.permute.xlu2 %335 }
 0x17e   :  { %v346_v8 = vpop.permute.xlu2 %345 }
 0x17f   :  { %v358_v9 = vsel %vm135_vm1, %v346_v8, 0.0 }
 0x180   :  { %v370_v10 = vmul.f32 %v358_v9, %v328_v7 }
 0x182   :  { %v376_v15 = vadd.f32 %v370_v10, %v364_v17 }
 0x18a   :  { %v338_v27 = vpop.permute.xlu0 %337  ;;  %v340_v30 = vpop.permute.xlu1 %339 }
 0x18b   :  { %v347_v33 = vsel %vm138_vm2, %v336_v4, %v338_v27  ;;  %v348_v17 = vsel %vm138_vm2, %v338_v27, %v340_v30  ;;  %v357_v35 = vsel %vm135_vm1, %v340_v30, 0.0 }
 0x18c   :  { %v365_v36 = vmul.f32 %v347_v33, %v323_v21  ;;  %v366_v37 = vmul.f32 %v348_v17, %v324_v28  ;;  %v367_v38 = vmul.f32 %v357_v35, %v325_v29 }
 0x18e   :  { %v373_v46 = vadd.f32 %v367_v38, %v361_v60  ;;  %v372_v47 = vadd.f32 %v366_v37, %v360_v61  ;;  %v371_v48 = vadd.f32 %v365_v36, %v359_v63  ;;  %v523_v63 = vld [vmem:[#allocation10 + $0x78] sm:$0xff]  ;;  %v538_v36 = vld [vmem:[#allocation10 + $0xf0] sm:$0xff]  ;;  %v521_v37 = vld [vmem:[#allocation10 + $0x68] sm:$0xff] }
 0x18f   :  { %548 = vmatpush.msra.mxu0 %v523_v63  ;;  %651 = vmatpush.msra.mxu3 %v523_v63  ;;  %v537_v38 = vld [vmem:[#allocation10 + $0xe8] sm:$0xff]  ;;  %v512_v63 = vld [vmem:[#allocation10 + $0x20] sm:$0xff] }
 0x190   :  { %420 = vrot.lane.b32.xlu1 %v373_v46, %s894_s4  ;;  %418 = vrot.lane.b32.xlu0 %v372_v47, %s894_s4  ;;  %v436_v52 = vmul.f32 %v384_v18, %v371_v48  ;;  %v437_v53 = vmul.f32 %v385_v50, %v372_v47  ;;  %v520_v18 = vld [vmem:[#allocation10 + $0x60] sm:$0xff]  ;;  %v519_v46 = vld [vmem:[#allocation10 + $0x58] sm:$0xff]  ;;  %v542_v47 = vld [vmem:[#allocation10 + $0x110] sm:$0xff] }
 0x191   :  { %416 = vrot.lane.b32.xlu2 %v371_v48, %s894_s4  ;;  %572 = vmatpush.msra.mxu1 %v538_v36  ;;  %v535_v48 = vld [vmem:[#allocation10 + $0xd8] sm:$0xff]  ;;  %v541_v50 = vld [vmem:[#allocation10 + $0x108] sm:$0xff] }
 0x192   :  { %v344_v55 = vpop.permute.xlu1 %343  ;;  %v342_v56 = vpop.permute.xlu0 %341  ;;  %607 = vmatpush.msra.mxu2 %v542_v47 }
 0x193   :  { %v350_v57 = vsel %vm138_vm2, %v344_v55, %v346_v8  ;;  %v349_v58 = vsel %vm138_vm2, %v342_v56, %v344_v55  ;;  %573 = vmatpush.msra.mxu1 %v537_v38  ;;  %v647_v55 = vmul.f32 -1.442695, %v958_v0  ;;  %v648_v56 = vmul.f32 -1.442695, %v964_v1 }
 0x194   :  { %v369_v59 = vmul.f32 %v350_v57, %v327_v54  ;;  %v368_v60 = vmul.f32 %v349_v58, %v326_v40  ;;  %v540_v54 = vld [vmem:[#allocation10 + $0x100] sm:$0xff]  ;;  %v517_v40 = vld [vmem:[#allocation10 + $0x48] sm:$0xff]  ;;  %608 = vmatpush.msra.mxu2 %v541_v50 }
 0x195   :  { %574 = vmatpush.msra.mxu1 %v536_v39  ;;  %v533_v57 = vld [vmem:[#allocation10 + $0xc8] sm:$0xff]  ;;  %v516_v58 = vld [vmem:[#allocation10 + $0x40] sm:$0xff]  ;;  %700 = vpow2.f32 %v647_v55 }
 0x196   :  { %v374_v61 = vadd.f32 %v368_v60, %v362_v2  ;;  %v375_v41 = vadd.f32 %v369_v59, %v1046_v16  ;;  %v389_v2 = vld [vmem:[#allocation5 + $0x3] ss:$4 sm:$0x7]  ;;  %609 = vmatpush.msra.mxu2 %v540_v54  ;;  %702 = vpow2.f32 %v648_v56 }
 0x197   :  { %v391_v4 = vperm.slane %v389_v2, 0  ;;  %v392_v43 = vperm.slane %v389_v2, 1  ;;  %575 = vmatpush.msra.mxu1 %v535_v48  ;;  %v532_v59 = vld [vmem:[#allocation10 + $0xc0] sm:$0xff]  ;;  %v515_v60 = vld [vmem:[#allocation10 + $0x38] sm:$0xff] }
 0x198   :  { %422 = vrot.lane.b32.xlu0 %v374_v61, %s894_s4  ;;  %v438_v34 = vmul.f32 %v386_v31, %v374_v61  ;;  %424 = vrot.lane.b32.xlu1 %v375_v41, %s894_s4  ;;  %v439_v62 = vmul.f32 %v387_v44, %v375_v41  ;;  %v531_v61 = vld [vmem:[#allocation10 + $0xb8] sm:$0xff]  ;;  %v514_v31 = vld [vmem:[#allocation10 + $0x30] sm:$0xff]  ;;  %v513_v44 = vld [vmem:[#allocation10 + $0x28] sm:$0xff] }
 0x199   :  { %426 = vrot.lane.b32.xlu2 %v376_v15, %s894_s4  ;;  %v395_v16 = vsub.f32 %v391_v4, %v989_v22  ;;  %v396_v42 = vsub.f32 %v392_v43, %v989_v22  ;;  %v397_v20 = vsub.f32 %v391_v4, %v996_v23  ;;  %v398_v24 = vsub.f32 %v392_v43, %v996_v23  ;;  %v522_v23 = vld [vmem:[#allocation10 + $0x70] sm:$0xff]  ;;  %v528_v2 = vld [vmem:[#allocation10 + $0xa0] sm:$0xff]  ;;  %v511_v4 = vld [vmem:[#allocation10 + $0x18] sm:$0xff] }
 0x19a   :  { %549 = vmatpush.msra.mxu0 %v522_v23  ;;  %652 = vmatpush.msra.mxu3 %v522_v23  ;;  %v530_v41 = vld [vmem:[#allocation10 + $0xb0] sm:$0xff] }
 0x19b   :  { %v406_v8 = vmul.f32 %v402_v49, %v395_v16  ;;  %v407_v9 = vmul.f32 %v403_v51, %v396_v42  ;;  %v408_v26 = vmul.f32 %v402_v49, %v397_v20  ;;  %v409_v21 = vmul.f32 %v403_v51, %v398_v24  ;;  %v510_v42 = vld [vmem:[#allocation10 + $0x10] sm:$0xff]  ;;  %v509_v51 = vld [vmem:[#allocation10 + $0x8] sm:$0xff] }
 0x19c   :  { %550 = vmatpush.msra.mxu0 %v521_v37  ;;  %653 = vmatpush.msra.mxu3 %v521_v37  ;;  %v526_v49 = vld [vmem:[#allocation10 + $0x90] sm:$0xff] }
 0x19e   :  { %551 = vmatpush.msra.mxu0 %v520_v18  ;;  %654 = vmatpush.msra.mxu3 %v520_v18 }
 0x1a0   :  { %552 = vmatpush.msra.mxu0 %v519_v46  ;;  %655 = vmatpush.msra.mxu3 %v519_v46 }
 0x1eb   :  { %v417_v6 = vpop.permute.xlu2 %416 }
 0x1f3   :  { %v427_v22 = vpop.permute.xlu2 %426 }
 0x202   :  { %v421_v7 = vpop.permute.xlu1 %420  ;;  %v419_v10 = vpop.permute.xlu0 %418 }
 0x203   :  { %v428_v11 = vsel %vm138_vm2, %v417_v6, %v419_v10  ;;  %v429_v14 = vsel %vm138_vm2, %v419_v10, %v421_v7  ;;  %v525_v6 = vld [vmem:[#allocation10 + $0x88] sm:$0xff]  ;;  %v508_v7 = vld [vmem:[#allocation10] sm:$0xff] }
 0x204   :  { %v440_v15 = vmul.f32 %v428_v11, %v406_v8  ;;  %v441_v12 = vmul.f32 %v429_v14, %v407_v9  ;;  %v524_v8 = vld [vmem:[#allocation10 + $0x80] sm:$0xff] }
 0x206   :  { %v444_v19 = vadd.f32 %v440_v15, %v436_v52  ;;  %v445_v13 = vadd.f32 %v441_v12, %v437_v53  ;;  %v518_v52 = vld [vmem:[#allocation10 + $0x50] sm:$0xff] }
 0x207   :  { %v534_v53 = vld [vmem:[#allocation10 + $0xd0] sm:$0xff]  ;;  %553 = vmatpush.msra.mxu0 %v518_v52  ;;  %656 = vmatpush.msra.mxu3 %v518_v52 }
 0x208   :  { %494 = vrot.lane.b32.xlu0 %v445_v13, %s895_s5  ;;  %576 = vmatpush.msra.mxu1 %v534_v53 }
 0x209   :  { %554 = vmatpush.msra.mxu0 %v517_v40  ;;  %657 = vmatpush.msra.mxu3 %v517_v40 }
 0x20a   :  { %v423_v25 = vpop.permute.xlu0 %422  ;;  %v425_v27 = vpop.permute.xlu1 %424  ;;  %577 = vmatpush.msra.mxu1 %v533_v57 }
 0x20b   :  { %v430_v28 = vsel %vm138_vm2, %v423_v25, %v425_v27  ;;  %v431_v29 = vsel %vm138_vm2, %v425_v27, %v427_v22  ;;  %555 = vmatpush.msra.mxu0 %v516_v58  ;;  %658 = vmatpush.msra.mxu3 %v516_v58 }
 0x20c   :  { %v442_v30 = vmul.f32 %v430_v28, %v408_v26  ;;  %v443_v32 = vmul.f32 %v431_v29, %v409_v21  ;;  %578 = vmatpush.msra.mxu1 %v532_v59 }
 0x20d   :  { %556 = vmatpush.msra.mxu0 %v515_v60  ;;  %659 = vmatpush.msra.mxu3 %v515_v60 }
 0x20e   :  { %v446_v33 = vadd.f32 %v442_v30, %v438_v34  ;;  %v447_v17 = vadd.f32 %v443_v32, %v439_v62  ;;  %579 = vmatpush.msra.mxu1 %v531_v61  ;;  %v529_v34 = vld [vmem:[#allocation10 + $0xa8] sm:$0xff]  ;;  %v701_v62 = vpop.eup %700 }
 0x20f   :  { %557 = vmatpush.msra.mxu0 %v514_v31  ;;  %660 = vmatpush.msra.mxu3 %v514_v31  ;;  %v703_v3 = vpop.eup %702  ;;  %v454_v43 = vadd.f32 1.0, %v701_v62 }
 0x210   :  { %498 = vrot.lane.b32.xlu2 %v447_v17, %s895_s5  ;;  %v695_v35 = vpack.i.bf16 %v446_v33, %v444_v19  ;;  %580 = vmatpush.msra.mxu1 %v530_v41  ;;  %v455_v16 = vadd.f32 1.0, %v703_v3 }
 0x211   :  { %558 = vmatpush.msra.mxu0 %v513_v44  ;;  %661 = vmatpush.msra.mxu3 %v513_v44  ;;  %704 = vrcp.f32 %v454_v43  ;;  %vm461_vm1 = vweird.f32 %v454_v43  ;;  %v467_v20 = vand.u32 2147483648, %v454_v43  ;;  %v465_v25 = vand.u32 2147483647, %v454_v43 }
 0x212   :  { %696 = vrot.lane.b32.xlu1 %v695_v35, %s895_s5  ;;  %581 = vmatpush.msra.mxu1 %v529_v34  ;;  %706 = vrcp.f32 %v455_v16  ;;  %vm476_vm8 = vweird.f32 %v455_v16  ;;  %v482_v24 = vand.u32 2147483648, %v455_v16  ;;  %v480_v21 = vand.u32 2147483647, %v455_v16 }
 0x213   :  { %559 = vmatpush.msra.mxu0 %v512_v63  ;;  %662 = vmatpush.msra.mxu3 %v512_v63  ;;  %v468_v28 = vor.u32 1.1754944e-38, %v467_v20  ;;  %vm466_vm12 = vcmp.eq.f32.partialorder %v465_v25, 8.507059e+37 }
 0x214   :  { %582 = vmatpush.msra.mxu1 %v528_v2  ;;  %v483_v29 = vor.u32 1.1754944e-38, %v482_v24  ;;  %vm481_vm13 = vcmp.eq.f32.partialorder %v480_v21, 8.507059e+37 }
 0x215   :  { %560 = vmatpush.msra.mxu0 %v511_v4  ;;  %663 = vmatpush.msra.mxu3 %v511_v4 }
 0x216   :  { %583 = vmatpush.msra.mxu1 %v527_v5 }
 0x217   :  { %561 = vmatpush.msra.mxu0 %v510_v42  ;;  %664 = vmatpush.msra.mxu3 %v510_v42  ;;  %v705_v9 = vpop.eup %704 }
 0x218   :  { %584 = vmatpush.msra.mxu1 %v526_v49  ;;  %v707_v10 = vpop.eup %706  ;;  %v457_v11 = vmul.f32 %v705_v9, %v454_v43  ;;  %vm462_vm2 = vweird.f32 %v705_v9 }
 0x219   :  { %562 = vmatpush.msra.mxu0 %v509_v51  ;;  %665 = vmatpush.msra.mxu3 %v509_v51  ;;  %v472_v14 = vmul.f32 %v707_v10, %v455_v16  ;;  %vm477_vm9 = vweird.f32 %v707_v10  ;;  %vm463_vm10 = vmor %vm461_vm1, %vm462_vm2 }
 0x21a   :  { %585 = vmatpush.msra.mxu1 %v525_v6  ;;  %v458_v15 = vsub.f32 1.0, %v457_v11  ;;  %vm478_vm11 = vmor %vm476_vm8, %vm477_vm9 }
 0x21b   :  { %563 = vmatpush.msra.mxu0 %v508_v7  ;;  %666 = vmatpush.msra.mxu3 %v508_v7  ;;  %v473_v12 = vsub.f32 1.0, %v472_v14 }
 0x21c   :  { %586 = vmatpush.msra.mxu1 %v524_v8  ;;  %v459_v19 = vmul.f32 %v705_v9, %v458_v15 }
 0x21d   :  { %v474_v13 = vmul.f32 %v707_v10, %v473_v12 }
 0x21e   :  { %v460_v22 = vadd.f32 %v705_v9, %v459_v19 }
 0x21f   :  { %v475_v26 = vadd.f32 %v707_v10, %v474_v13 }
 0x220   :  { %v464_v30 = vsel %vm463_vm10, %v705_v9, %v460_v22 }
 0x221   :  { %v479_v32 = vsel %vm478_vm11, %v707_v10, %v475_v26  ;;  %v469_v33 = vsel %vm466_vm12, %v468_v28, %v464_v30 }
 0x222   :  { %v484_v17 = vsel %vm481_vm13, %v483_v29, %v479_v32  ;;  %v486_v23 = vmul.f32 %v469_v33, %v958_v0 }
 0x223   :  { %v487_v36 = vmul.f32 %v484_v17, %v964_v1 }
 0x26a   :  { %v499_v35 = vpop.permute.xlu2 %498 }
 0x27a   :  { %v495_v27 = vpop.permute.xlu0 %494 }
 0x27b   :  { %649 = vmatmul.msk.f32.vlgmr.msra.gmra.mxu2 %vm132_vm0, %v495_v27 }
 0x283   :  { %650 = vmatmul.msk.f32.gmra.mxu2 %vm132_vm0, %v499_v35 }
 0x284   :  { %v697_v37 = vpop.permute.xlu1 %696 }
 0x285   :  { %v699_v38 = vunpack.i.h.bf16 %v697_v37  ;;  %v698_v18 = vunpack.i.l.bf16 %v697_v37 }
 0x287   :  { %v506_v39 = vsel %vm132_vm0, %v486_v23, %v698_v18  ;;  %v507_v45 = vsel %vm132_vm0, %v487_v36, %v699_v38  ;;  %v500_v46 = vsel %vm132_vm0, %v698_v18, %v495_v27  ;;  %v501_v47 = vsel %vm132_vm0, %v699_v38, %v499_v35 }
 0x288   :  { %564 = vmatmul.f32.vlgmr.msra.gmra.mxu0 %v506_v39  ;;  %567 = vmatmul.f32.vlgmr.msra.gmra.mxu3 %v507_v45 }
 0x289   :  { %587 = vmatmul.f32.vlgmr.msra.gmra.mxu1 %v500_v46 }
 0x291   :  { %590 = vmatmul.f32.gmra.mxu1 %v501_v47 }
 0x2fe   :  { %v611_v50 = vpop.f32.mrf.mxu2 }
 0x305   :  { %v565_v48 = vpop.f32.mrf.mxu0 }
 0x306   :  { %v588_v0 = vpop.f32.mrf.mxu1  ;;  %v614_v40 = vpop.f32.mrf.mxu2 }
 0x307   :  { %v589_v52 = vadd.f32 %v588_v0, %v565_v48 }
 0x309   :  { %v612_v1 = vadd.f32 %v611_v50, %v589_v52 }
 0x30b   :  { %617 = vst [vmem:[#allocation13] sm:$0xff] %v612_v1  ;;  %v568_v53 = vpop.f32.mrf.mxu3 }
 0x30e   :  { %v591_v54 = vpop.f32.mrf.mxu1 }
 0x30f   :  { %v592_v55 = vadd.f32 %v591_v54, %v568_v53 }
 0x311   :  { %v615_v56 = vadd.f32 %v614_v40, %v592_v55 }
 0x313   :  { %618 = vst [vmem:[#allocation13 + $0x8] sm:$0xff] %v615_v56 }
 0x314   :  { %631 = dma.vmem_to_hbm [thread:$0]  %s624_s27, 256, %s626_s30, [#allocation4], %s891_s21, %s891_s21, %s892_s22  }
 0x315   :  { %884 = dma.done.wait [#allocation4], 256  }
 0x316   :  { %885 = vsyncadd [#allocation4], 4294967040 }
 0x317   :  { %636 = vsyncpa [#allocation3], 1 }
 0x318   :  { %637 = vsyncpa [#allocation6], 1 }
 0x319   :  { %638 = vsyncpa [#allocation9], 1 }
 0x31a   :  { %639 = vsyncpa [#allocation12], 1 }
 0x31b   :  { %640 = vsyncpa [#allocation4], 1 }

</bundles_post_ra>
